<compile_context>
chip_gen: v7x
topology: tpu7x:2x2x1
jax: 0.10.0
libtpu: 0.0.40
codegen_flags: <defaults>
</compile_context>

<pallas_src>
import functools

import jax
import jax.numpy as jnp
import numpy as np
from jax.experimental import pallas as pl
from jax.experimental.pallas import tpu as pltpu

# -------- small config consistent with the module --------
Z_DIM = 8        # config.model.z_dim
HIDDEN = 256     # fixed by the module definition
BATCH = 64


def _round_up(x, m):
    return -(-x // m) * m


def _device_tuning():
    """Pick (matmul/tanh operand dtype, MXU M-granularity) for the local TPU."""
    try:
        kind = jax.devices()[0].device_kind.lower()
    except Exception:  # pragma: no cover - be safe on exotic backends
        kind = ""
    if ("v6" in kind) or ("v7" in kind):
        # bf16-native MXU and EUP; 256x256 MXU tiles.
        return jnp.bfloat16, 256
    # v5e (and older / unknown): keep f32 everywhere, 128-wide MXU M tiles.
    return jnp.float32, 128


# ---------------- Pallas kernel (whole MLP fused) ----------------
def mlp_score_kernel(z_ref, w1_ref, b1_ref, w2_ref, b2_ref, w3_ref, b3_ref,
                     o_ref, *, compute_dtype):
    # z : (tm, Z)         w1: (Z, H)    b1: (1, H)   (f32)
    # h1: (tm, H)         w2: (H, H)    b2: (1, H)   (f32)
    # h2: (tm, H)         w3: (H, Zp)   b3: (1, Zp)  (f32)   Zp = 128 (lane-dense)
    # o : (tm, Zp) f32
    # Matmuls accumulate in f32; operands may be bf16 on v6e/v7x.
    h = jnp.dot(z_ref[...], w1_ref[...],
                preferred_element_type=jnp.float32) + b1_ref[...]
    h = jnp.tanh(h.astype(compute_dtype))
    h = jnp.dot(h, w2_ref[...],
                preferred_element_type=jnp.float32) + b2_ref[...]
    h = jnp.tanh(h.astype(compute_dtype))
    o_ref[...] = jnp.dot(h, w3_ref[...],
                         preferred_element_type=jnp.float32) + b3_ref[...]


# ---------------- wrapper ----------------
def mlp_score_pallas(z, params, *, block_m=1024):
    N, Z = z.shape
    H = params["w1"].shape[1]
    compute_dtype, m_gran = _device_tuning()

    # --- lane-dense final layer: pad the z_dim output to 128 lanes ---
    Zp = _round_up(max(Z, 128), 128)
    w3p = jnp.zeros((H, Zp), jnp.float32).at[:, :Z].set(params["w3"])
    b3p = jnp.zeros((1, Zp), jnp.float32).at[0, :Z].set(params["b3"])

    # --- batch tile selection (largest useful tile; ragged tail padded) ---
    if N <= 2 * m_gran:
        # Tiny batch: one tile, rounded to the sublane multiple. Splitting it
        # would only add per-step overhead.
        tm = _round_up(N, 8)
    else:
        # Big batch: block_m rounded to MXU M-granularity, capped so that the
        # grid has at least 2 steps (feeds both TensorCores on v7x).
        tm = min(_round_up(block_m, m_gran), _round_up(pl.cdiv(N, 2), m_gran))
    n_pad = _round_up(N, tm)
    zp = z if n_pad == N else jnp.pad(z, ((0, n_pad - N), (0, 0)))
    grid = (n_pad // tm,)

    # --- operand dtypes (bf16 on v6e/v7x, f32 on v5e); biases stay f32 ---
    if compute_dtype == jnp.bfloat16:
        zp = zp.astype(jnp.bfloat16)
        w1 = params["w1"].astype(jnp.bfloat16)
        w2 = params["w2"].astype(jnp.bfloat16)
        w3p = w3p.astype(jnp.bfloat16)
    else:
        w1 = params["w1"].astype(jnp.float32)
        w2 = params["w2"].astype(jnp.float32)
    b1 = params["b1"].reshape(1, H).astype(jnp.float32)
    b2 = params["b2"].reshape(1, H).astype(jnp.float32)

    # --- advisory cost estimate so XLA can overlap this small call ---
    itemsize = jnp.dtype(zp.dtype).itemsize
    w_bytes = (w1.size + w2.size + w3p.size) * jnp.dtype(w1.dtype).itemsize
    cost = pl.CostEstimate(
        flops=2 * n_pad * (Z * H + H * H + H * Zp),
        transcendentals=2 * n_pad * H,
        bytes_accessed=w_bytes + (2 * H + Zp) * 4
        + n_pad * Z * itemsize + n_pad * Zp * 4,
    )

    full = lambda i: (0, 0)
    out = pl.pallas_call(
        functools.partial(mlp_score_kernel, compute_dtype=compute_dtype),
        out_shape=jax.ShapeDtypeStruct((n_pad, Zp), jnp.float32),
        grid=grid,
        in_specs=[
            pl.BlockSpec((tm, Z), lambda i: (i, 0)),   # z  (batch tiled)
            pl.BlockSpec((Z, H), full),                # w1 (VMEM-resident)
            pl.BlockSpec((1, H), full),                # b1
            pl.BlockSpec((H, H), full),                # w2
            pl.BlockSpec((1, H), full),                # b2
            pl.BlockSpec((H, Zp), full),               # w3 (lane-dense padded)
            pl.BlockSpec((1, Zp), full),               # b3 (lane-dense padded)
        ],
        out_specs=pl.BlockSpec((tm, Zp), lambda i: (i, 0)),
        compiler_params=pltpu.CompilerParams(
            dimension_semantics=("parallel",)),
        cost_estimate=cost,
    )(zp, w1, b1, w2, b2, w3p, b3p)

    # Slice off batch padding and the lane padding of the final layer.
    return out[:N, :Z]


# ---------------- deterministic parameter init ----------------
def init_params(key):
    ks = jax.random.split(key, 6)
    # PyTorch Linear weight is (out, in); we store the transposed (in, out)
    # layout so the kernel computes x @ W directly.
    w1 = 0.05 * jax.random.normal(ks[0], (Z_DIM, HIDDEN), jnp.float32)
    b1 = 0.01 * jax.random.normal(ks[1], (HIDDEN,), jnp.float32)
    w2 = 0.05 * jax.random.normal(ks[2], (HIDDEN, HIDDEN), jnp.float32)
    b2 = 0.01 * jax.random.normal(ks[3], (HIDDEN,), jnp.float32)
    w3 = 0.05 * jax.random.normal(ks[4], (HIDDEN, Z_DIM), jnp.float32)
    b3 = 0.01 * jax.random.normal(ks[5], (Z_DIM,), jnp.float32)
    return {"w1": w1, "b1": b1, "w2": w2, "b2": b2, "w3": w3, "b3": b3}


# ---------------- pure-JAX reference (same semantics as PyTorch) ----------------
def ref_forward(z, p):
    h = jnp.tanh(z @ p["w1"] + p["b1"])
    h = jnp.tanh(h @ p["w2"] + p["b2"])
    return h @ p["w3"] + p["b3"]


if __name__ == "__main__":
    key = jax.random.PRNGKey(0)
    pkey, zkey, zkey2 = jax.random.split(key, 3)
    params = init_params(pkey)

    compute_dtype, _ = _device_tuning()
    if compute_dtype == jnp.bfloat16:
        rtol, atol = 2e-2, 2e-2   # bf16 operands on v6e/v7x
    else:
        rtol, atol = 1e-4, 1e-4   # f32 path (v5e and others)

    # Demo-size batch.
    z = jax.random.normal(zkey, (BATCH, Z_DIM), jnp.float32)
    out = jax.block_until_ready(mlp_score_pallas(z, params))
    assert out.shape == (BATCH, Z_DIM), out.shape
    ref = jax.block_until_ready(ref_forward(z, params))
    np.testing.assert_allclose(np.asarray(out), np.asarray(ref),
                               rtol=rtol, atol=atol)

    # Ragged batch (not a multiple of the tile) exercises the padding path.
    z2 = jax.random.normal(zkey2, (50, Z_DIM), jnp.float32)
    out2 = jax.block_until_ready(mlp_score_pallas(z2, params))
    assert out2.shape == (50, Z_DIM), out2.shape
    ref2 = jax.block_until_ready(ref_forward(z2, params))
    np.testing.assert_allclose(np.asarray(out2), np.asarray(ref2),
                               rtol=rtol, atol=atol)

    print("KERNEL_OK")
</pallas_src>

<mosaic_0001>
module attributes {stable_mosaic.version = 11 : i64} {
  func.func @mlp_score_kernel(%arg0: i32, %arg1: memref<64x8xf32, #tpu.memory_space<vmem>>, %arg2: memref<8x256xf32, #tpu.memory_space<vmem>>, %arg3: memref<1x256xf32, #tpu.memory_space<vmem>>, %arg4: memref<256x256xf32, #tpu.memory_space<vmem>>, %arg5: memref<1x256xf32, #tpu.memory_space<vmem>>, %arg6: memref<256x128xf32, #tpu.memory_space<vmem>>, %arg7: memref<1x128xf32, #tpu.memory_space<vmem>>, %arg8: memref<64x128xf32, #tpu.memory_space<vmem>>) attributes {dimension_semantics = [#tpu.dimension_semantics<parallel>], iteration_bounds = array<i64: 1>, scalar_prefetch = 0 : i64, scratch_operands = 0 : i64, tpu.core_type = #tpu.core_type<tc>, window_params = [{transform_indices = @transform_0, window_bounds = array<i64: 64, 8>}, {pipeline_mode = #tpu.pipeline_mode<synchronous>, transform_indices = @transform_1, window_bounds = array<i64: 8, 256>}, {pipeline_mode = #tpu.pipeline_mode<synchronous>, transform_indices = @transform_2, window_bounds = array<i64: 1, 256>}, {pipeline_mode = #tpu.pipeline_mode<synchronous>, transform_indices = @transform_3, window_bounds = array<i64: 256, 256>}, {pipeline_mode = #tpu.pipeline_mode<synchronous>, transform_indices = @transform_4, window_bounds = array<i64: 1, 256>}, {pipeline_mode = #tpu.pipeline_mode<synchronous>, transform_indices = @transform_5, window_bounds = array<i64: 256, 128>}, {pipeline_mode = #tpu.pipeline_mode<synchronous>, transform_indices = @transform_6, window_bounds = array<i64: 1, 128>}, {transform_indices = @transform_7, window_bounds = array<i64: 64, 128>}]} {
    %c0 = arith.constant 0 : index
    %c0_0 = arith.constant 0 : index
    %0 = vector.load %arg1[%c0, %c0_0] : memref<64x8xf32, #tpu.memory_space<vmem>>, vector<64x8xf32>
    %c0_1 = arith.constant 0 : index
    %c0_2 = arith.constant 0 : index
    %1 = vector.load %arg2[%c0_1, %c0_2] : memref<8x256xf32, #tpu.memory_space<vmem>>, vector<8x256xf32>
    %cst = arith.constant dense<0.000000e+00> : vector<64x256xf32>
    %2 = tpu.matmul %0, %1, %cst {dimension_numbers = #tpu.dot_dimension_numbers<[1], [0], [0], [1], [0, 0, 1, 1], [], []>} : vector<64x8xf32>, vector<8x256xf32>, vector<64x256xf32> -> vector<64x256xf32>
    %c0_3 = arith.constant 0 : index
    %c0_4 = arith.constant 0 : index
    %3 = vector.load %arg3[%c0_3, %c0_4] : memref<1x256xf32, #tpu.memory_space<vmem>>, vector<1x256xf32>
    %4 = vector.broadcast %3 : vector<1x256xf32> to vector<64x256xf32>
    %5 = arith.addf %2, %4 : vector<64x256xf32>
    %6 = math.tanh %5 : vector<64x256xf32>
    %c0_5 = arith.constant 0 : index
    %c0_6 = arith.constant 0 : index
    %7 = vector.load %arg4[%c0_5, %c0_6] : memref<256x256xf32, #tpu.memory_space<vmem>>, vector<256x256xf32>
    %cst_7 = arith.constant dense<0.000000e+00> : vector<64x256xf32>
    %8 = tpu.matmul %6, %7, %cst_7 {dimension_numbers = #tpu.dot_dimension_numbers<[1], [0], [0], [1], [0, 0, 1, 1], [], []>} : vector<64x256xf32>, vector<256x256xf32>, vector<64x256xf32> -> vector<64x256xf32>
    %c0_8 = arith.constant 0 : index
    %c0_9 = arith.constant 0 : index
    %9 = vector.load %arg5[%c0_8, %c0_9] : memref<1x256xf32, #tpu.memory_space<vmem>>, vector<1x256xf32>
    %10 = vector.broadcast %9 : vector<1x256xf32> to vector<64x256xf32>
    %11 = arith.addf %8, %10 : vector<64x256xf32>
    %12 = math.tanh %11 : vector<64x256xf32>
    %c0_10 = arith.constant 0 : index
    %c0_11 = arith.constant 0 : index
    %13 = vector.load %arg6[%c0_10, %c0_11] : memref<256x128xf32, #tpu.memory_space<vmem>>, vector<256x128xf32>
    %cst_12 = arith.constant dense<0.000000e+00> : vector<64x128xf32>
    %14 = tpu.matmul %12, %13, %cst_12 {dimension_numbers = #tpu.dot_dimension_numbers<[1], [0], [0], [1], [0, 0, 1, 1], [], []>} : vector<64x256xf32>, vector<256x128xf32>, vector<64x128xf32> -> vector<64x128xf32>
    %c0_13 = arith.constant 0 : index
    %c0_14 = arith.constant 0 : index
    %15 = vector.load %arg7[%c0_13, %c0_14] : memref<1x128xf32, #tpu.memory_space<vmem>>, vector<1x128xf32>
    %16 = vector.broadcast %15 : vector<1x128xf32> to vector<64x128xf32>
    %17 = arith.addf %14, %16 : vector<64x128xf32>
    %c0_15 = arith.constant 0 : index
    %c0_16 = arith.constant 0 : index
    %18 = vector.load %arg8[%c0_15, %c0_16] : memref<64x128xf32, #tpu.memory_space<vmem>>, vector<64x128xf32>
    tpu.vector_store %arg8[%c0_15, %c0_16], %17 {strides = array<i32>} : memref<64x128xf32, #tpu.memory_space<vmem>>, vector<64x128xf32>,
    return
  }
  func.func @transform_0(%arg0: i32) -> (i32, i32) {
    %c0_i32 = arith.constant 0 : i32
    %c0_i32_0 = arith.constant 0 : i32
    return %arg0, %c0_i32 : i32, i32
  }
  func.func @transform_1(%arg0: i32) -> (i32, i32) {
    %c0_i32 = arith.constant 0 : i32
    %c0_i32_0 = arith.constant 0 : i32
    %c0_i32_1 = arith.constant 0 : i32
    return %c0_i32, %c0_i32_0 : i32, i32
  }
  func.func @transform_2(%arg0: i32) -> (i32, i32) {
    %c0_i32 = arith.constant 0 : i32
    %c0_i32_0 = arith.constant 0 : i32
    %c0_i32_1 = arith.constant 0 : i32
    return %c0_i32, %c0_i32_0 : i32, i32
  }
  func.func @transform_3(%arg0: i32) -> (i32, i32) {
    %c0_i32 = arith.constant 0 : i32
    %c0_i32_0 = arith.constant 0 : i32
    %c0_i32_1 = arith.constant 0 : i32
    return %c0_i32, %c0_i32_0 : i32, i32
  }
  func.func @transform_4(%arg0: i32) -> (i32, i32) {
    %c0_i32 = arith.constant 0 : i32
    %c0_i32_0 = arith.constant 0 : i32
    %c0_i32_1 = arith.constant 0 : i32
    return %c0_i32, %c0_i32_0 : i32, i32
  }
  func.func @transform_5(%arg0: i32) -> (i32, i32) {
    %c0_i32 = arith.constant 0 : i32
    %c0_i32_0 = arith.constant 0 : i32
    %c0_i32_1 = arith.constant 0 : i32
    return %c0_i32, %c0_i32_0 : i32, i32
  }
  func.func @transform_6(%arg0: i32) -> (i32, i32) {
    %c0_i32 = arith.constant 0 : i32
    %c0_i32_0 = arith.constant 0 : i32
    %c0_i32_1 = arith.constant 0 : i32
    return %c0_i32, %c0_i32_0 : i32, i32
  }
  func.func @transform_7(%arg0: i32) -> (i32, i32) {
    %c0_i32 = arith.constant 0 : i32
    %c0_i32_0 = arith.constant 0 : i32
    return %arg0, %c0_i32 : i32, i32
  }
}

</mosaic_0001>

<bundles_post_ra>
// kernel: tpu_custom_call.1
= control target key start
LH: loop header
LB: loop body
LE: loop exit
PB: predicated region body
PF: predicated region fallthrough
CT: control target
= control target key end

     0   :  { %12 = vsyncpa [#allocation3], 0  ;;  %s1088_s0 = inlined_call_operand.vmem [shape: f32[64,8], index: 0, kind: input, shape index: {}]   ;;  %s1089_s1 = inlined_call_operand.vmem [shape: f32[8,256], index: 1, kind: input, shape index: {}]   ;;  %s1090_s2 = inlined_call_operand.vmem [shape: f32[1,256], index: 2, kind: input, shape index: {}]   ;;  %s1091_s3 = inlined_call_operand.hbm [shape: f32[256,256], index: 3, kind: input, shape index: {}]   ;;  %s1092_s4 = inlined_call_operand.vmem [shape: f32[1,256], index: 4, kind: input, shape index: {}]   ;;  %s1093_s5 = inlined_call_operand.hbm [shape: f32[256,128], index: 5, kind: input, shape index: {}]   ;;  %s1094_s6 = inlined_call_operand.vmem [shape: f32[1,128], index: 6, kind: input, shape index: {}]   ;;  %s1095_s7 = inlined_call_operand.hbm [shape: f32[64,128], index: 7, kind: output, shape index: {}]  }
   0x1   :  { %13 = vsyncpa [#allocation6], 0 }
   0x2   :  { %14 = vsyncpa [#allocation4], 0  ;;  %s911_s24 = smov [#allocation2]   ;;  %s839_s28 = scalar_lea.hbm %s1091_s3, 8192 }
   0x3   :  { %s26_s25 = sshll.u32 %s911_s24, 4  ;;  %p840_p0 = scmp.ne.s32.totalorder %s1091_s3, %s839_s28  ;;  %s27_s25 = int_to_ptr.vmem [resolvable:$true] %s26_s25 }
   0x4   :  { %p843_p1 = scmp.lt.u32.totalorder %s839_s28, %s1091_s3 }
   0x6   :  { %p845_p2 = pnand %p843_p1, %p840_p0 }
   0x8   :  { %848 = shalt.err (!%p845_p2)
}
   0x9   :  { %s849_s10 = scalar_lea.vmem %s27_s25, 8192  ;;  %p854_p4 = scmp.lt.s32.totalorder %s27_s25, %s27_s25 }
   0xa   :  { %p850_p3 = scmp.ne.s32.totalorder %s27_s25, %s849_s10  ;;  %p855_p5 = scmp.lt.s32.totalorder %s849_s10, %s849_s10 }
   0xc   :  { %p856_p6 = por %p855_p5, %p854_p4 }
   0xe   :  { %p857_p7 = pnand %p856_p6, %p850_p3 }
  0x10   :  { %860 = shalt.err (!%p857_p7)
}
  0x11   :  { %s912_s11 = smov 256   ;;  %s913_s12 = smov 16  }
  0x12   :  { %32 = dma.hbm_to_vmem [thread:$0]  %s1091_s3, 8192, %s27_s25, [#allocation3], %s912_s11, %s912_s11, %s913_s12  }
  0x13   :  { %s914_s15 = smov [#allocation5]   ;;  %s861_s19 = scalar_lea.hbm %s1093_s5, 4096 }
  0x14   :  { %s40_s16 = sshll.u32 %s914_s15, 4  ;;  %p862_p8 = scmp.ne.s32.totalorder %s1093_s5, %s861_s19  ;;  %s41_s16 = int_to_ptr.vmem [resolvable:$true] %s40_s16 }
  0x15   :  { %p865_p9 = scmp.lt.u32.totalorder %s861_s19, %s1093_s5 }
  0x17   :  { %p867_p10 = pnand %p865_p9, %p862_p8 }
  0x19   :  { %870 = shalt.err (!%p867_p10)
}
  0x1a   :  { %s871_s24 = scalar_lea.vmem %s41_s16, 4096  ;;  %p876_p12 = scmp.lt.s32.totalorder %s41_s16, %s41_s16 }
  0x1b   :  { %p872_p11 = scmp.ne.s32.totalorder %s41_s16, %s871_s24  ;;  %p877_p13 = scmp.lt.s32.totalorder %s871_s24, %s871_s24 }
  0x1d   :  { %p878_p0 = por %p877_p13, %p876_p12 }
  0x1f   :  { %p879_p1 = pnand %p878_p0, %p872_p11 }
  0x21   :  { %882 = shalt.err (!%p879_p1)
}
  0x22   :  { %s915_s3 = smov 128   ;;  %s916_s25 = smov 8  }
  0x23   :  { %46 = dma.hbm_to_vmem [thread:$0]  %s1093_s5, 4096, %s41_s16, [#allocation6], %s915_s3, %s915_s3, %s916_s25  }
  0x24   :  { %905 = dma.done.wait [#allocation3], 8192  }
  0x25   :  { %906 = vsyncadd [#allocation3], 4294959104 }
  0x26   :  { %907 = dma.done.wait [#allocation6], 4096  }
  0x27   :  { %908 = vsyncadd [#allocation6], 4294963200  ;;  %v917_v0 = vmov 0.0   ;;  %v64_v1 = vld [vmem:[%s1089_s1 + $0x8] sm:$0xff]  ;;  %v63_v2 = vld [vmem:[%s1089_s1] sm:$0xff]  ;;  %vm77_vm0 = vcmask 64512  }
  0x28   :  { %166 = vmatprep.mubr.f32.mxu0 %v917_v0  ;;  %v55_v3 = vld [vmem:[%s1088_s0] sm:$0xff]  ;;  %102 = vmatprep.subr.mxu0 %v64_v1  ;;  %v56_v4 = vld [vmem:[%s1088_s0 + $0x8] sm:$0xff]  ;;  %v234_v6 = vld [vmem:[#allocation2 + $0x18] sm:$0xff] }
  0x29   :  { %103 = vmatpush1.msra.mxu0 %v63_v2  ;;  %v232_v5 = vld [vmem:[#allocation2 + $0x8] sm:$0xff]  ;;  %v231_v8 = vld [vmem:[#allocation2] sm:$0xff]  ;;  %v233_v9 = vld [vmem:[#allocation2 + $0x10] sm:$0xff] }
  0x2a   :  { %606 = vmatmul.mubr.msk.f32.vlgmr.msra.gmra.mrb[0].mxu0 %vm77_vm0, %v55_v3  ;;  %v671_v7 = vpack.c.bf16 %v234_v6, %v232_v5  ;;  %v236_v10 = vld [vmem:[#allocation2 + $0x28] sm:$0xff]  ;;  %v673_v11 = vpack.c.bf16 %v233_v9, %v231_v8  ;;  %v238_v12 = vld [vmem:[#allocation2 + $0x38] sm:$0xff]  ;;  %v235_v13 = vld [vmem:[#allocation2 + $0x20] sm:$0xff] }
  0x2b   :  { %172 = vmatprep.mubr.f32.mxu0 %v917_v0  ;;  %v237_v14 = vld [vmem:[#allocation2 + $0x30] sm:$0xff]  ;;  %v675_v15 = vpack.c.bf16 %v238_v12, %v236_v10  ;;  %v240_v16 = vld [vmem:[#allocation2 + $0x48] sm:$0xff]  ;;  %v242_v17 = vld [vmem:[#allocation2 + $0x58] sm:$0xff] }
  0x2c   :  { %672 = vmatprep.subr.bf16.mxu1 %v671_v7  ;;  %v677_v18 = vpack.c.bf16 %v237_v14, %v235_v13  ;;  %v57_v19 = vld [vmem:[%s1088_s0 + $0x10] sm:$0xff]  ;;  %v679_v20 = vpack.c.bf16 %v242_v17, %v240_v16  ;;  %v239_v21 = vld [vmem:[#allocation2 + $0x40] sm:$0xff]  ;;  %v244_v23 = vld [vmem:[#allocation2 + $0x68] sm:$0xff] }
  0x2d   :  { %674 = vmatpush1.bf16.msra.mxu1 %v673_v11  ;;  %v241_v22 = vld [vmem:[#allocation2 + $0x50] sm:$0xff]  ;;  %v246_v24 = vld [vmem:[#allocation2 + $0x78] sm:$0xff]  ;;  %v243_v28 = vld [vmem:[#allocation2 + $0x60] sm:$0xff] }
  0x2e   :  { %607 = vmatmul.mubr.msk.f32.gmra.mrb[2].mxu0 %vm77_vm0, %v56_v4  ;;  %676 = vmatprep.subr.bf16.mxu1 %v675_v15  ;;  %v681_v25 = vpack.c.bf16 %v241_v22, %v239_v21  ;;  %v58_v26 = vld [vmem:[%s1088_s0 + $0x18] sm:$0xff]  ;;  %v683_v27 = vpack.c.bf16 %v246_v24, %v244_v23  ;;  %v245_v29 = vld [vmem:[#allocation2 + $0x70] sm:$0xff]  ;;  %v248_v30 = vld [vmem:[#allocation2 + $0x88] sm:$0xff] }
  0x2f   :  { %178 = vmatprep.mubr.f32.mxu0 %v917_v0  ;;  %v250_v31 = vld [vmem:[#allocation2 + $0x98] sm:$0xff]  ;;  %v685_v32 = vpack.c.bf16 %v245_v29, %v243_v28  ;;  %v59_v33 = vld [vmem:[%s1088_s0 + $0x20] sm:$0xff]  ;;  %v249_v36 = vld [vmem:[#allocation2 + $0x90] sm:$0xff] }
  0x30   :  { %v687_v34 = vpack.c.bf16 %v250_v31, %v248_v30  ;;  %v247_v35 = vld [vmem:[#allocation2 + $0x80] sm:$0xff]  ;;  %v252_v37 = vld [vmem:[#allocation2 + $0xa8] sm:$0xff]  ;;  %v254_v38 = vld [vmem:[#allocation2 + $0xb8] sm:$0xff] }
  0x31   :  { %678 = vmatpush1.bf16.msra.mxu1 %v677_v18  ;;  %v689_v39 = vpack.c.bf16 %v249_v36, %v247_v35  ;;  %v60_v40 = vld [vmem:[%s1088_s0 + $0x28] sm:$0xff]  ;;  %v691_v41 = vpack.c.bf16 %v254_v38, %v252_v37  ;;  %v251_v42 = vld [vmem:[#allocation2 + $0xa0] sm:$0xff]  ;;  %v253_v43 = vld [vmem:[#allocation2 + $0xb0] sm:$0xff] }
  0x32   :  { %608 = vmatmul.mubr.msk.f32.gmra.mrb[4].mxu0 %vm77_vm0, %v57_v19  ;;  %680 = vmatprep.subr.bf16.mxu1 %v679_v20  ;;  %v256_v44 = vld [vmem:[#allocation2 + $0xc8] sm:$0xff]  ;;  %v258_v45 = vld [vmem:[#allocation2 + $0xd8] sm:$0xff]  ;;  %v693_v46 = vpack.c.bf16 %v253_v43, %v251_v42  ;;  %v61_v47 = vld [vmem:[%s1088_s0 + $0x30] sm:$0xff] }
  0x33   :  { %184 = vmatprep.mubr.f32.mxu0 %v917_v0  ;;  %v695_v48 = vpack.c.bf16 %v258_v45, %v256_v44  ;;  %v255_v49 = vld [vmem:[#allocation2 + $0xc0] sm:$0xff]  ;;  %v257_v50 = vld [vmem:[#allocation2 + $0xd0] sm:$0xff]  ;;  %v260_v51 = vld [vmem:[#allocation2 + $0xe8] sm:$0xff] }
  0x34   :  { %v262_v52 = vld [vmem:[#allocation2 + $0xf8] sm:$0xff]  ;;  %v697_v53 = vpack.c.bf16 %v257_v50, %v255_v49  ;;  %v259_v56 = vld [vmem:[#allocation2 + $0xe0] sm:$0xff]  ;;  %v261_v57 = vld [vmem:[#allocation2 + $0xf0] sm:$0xff] }
  0x35   :  { %682 = vmatpush1.bf16.msra.mxu1 %v681_v25  ;;  %v62_v54 = vld [vmem:[%s1088_s0 + $0x38] sm:$0xff]  ;;  %v699_v55 = vpack.c.bf16 %v262_v52, %v260_v51  ;;  %v264_v58 = vld [vmem:[#allocation2 + $0x108] sm:$0xff]  ;;  %v701_v60 = vpack.c.bf16 %v261_v57, %v259_v56  ;;  %v263_v62 = vld [vmem:[#allocation2 + $0x100] sm:$0xff] }
  0x36   :  { %609 = vmatmul.mubr.msk.f32.gmra.mrb[6].mxu0 %vm77_vm0, %v58_v26  ;;  %684 = vmatprep.subr.bf16.mxu1 %v683_v27  ;;  %v266_v59 = vld [vmem:[#allocation2 + $0x118] sm:$0xff]  ;;  %v265_v63 = vld [vmem:[#allocation2 + $0x110] sm:$0xff]  ;;  %v268_v1 = vld [vmem:[#allocation2 + $0x128] sm:$0xff] }
  0x37   :  { %190 = vmatprep.mubr.f32.mxu0 %v917_v0  ;;  %v703_v61 = vpack.c.bf16 %v266_v59, %v264_v58  ;;  %v705_v2 = vpack.c.bf16 %v265_v63, %v263_v62  ;;  %v267_v4 = vld [vmem:[#allocation2 + $0x120] sm:$0xff]  ;;  %v269_v5 = vld [vmem:[#allocation2 + $0x130] sm:$0xff]  ;;  %v272_v6 = vld [vmem:[#allocation2 + $0x148] sm:$0xff] }
  0x38   :  { %v274_v7 = vld [vmem:[#allocation2 + $0x158] sm:$0xff]  ;;  %v709_v8 = vpack.c.bf16 %v269_v5, %v267_v4  ;;  %v271_v10 = vld [vmem:[#allocation2 + $0x140] sm:$0xff]  ;;  %v273_v11 = vld [vmem:[#allocation2 + $0x150] sm:$0xff] }
  0x39   :  { %686 = vmatpush1.bf16.msra.mxu1 %v685_v32  ;;  %v711_v9 = vpack.c.bf16 %v274_v7, %v272_v6  ;;  %v276_v12 = vld [vmem:[#allocation2 + $0x168] sm:$0xff]  ;;  %v278_v13 = vld [vmem:[#allocation2 + $0x178] sm:$0xff]  ;;  %v713_v14 = vpack.c.bf16 %v273_v11, %v271_v10  ;;  %v275_v16 = vld [vmem:[#allocation2 + $0x160] sm:$0xff]  ;;  %v67_v6 = vlaneseq }
  0x3a   :  { %610 = vmatmul.mubr.msk.f32.gmra.mrb[8].mxu0 %vm77_vm0, %v59_v33  ;;  %688 = vmatprep.subr.bf16.mxu1 %v687_v34  ;;  %v715_v15 = vpack.c.bf16 %v278_v13, %v276_v12  ;;  %v277_v17 = vld [vmem:[#allocation2 + $0x170] sm:$0xff]  ;;  %v280_v19 = vld [vmem:[#allocation2 + $0x188] sm:$0xff]  ;;  %v282_v20 = vld [vmem:[#allocation2 + $0x198] sm:$0xff] }
  0x3b   :  { %196 = vmatprep.mubr.f32.mxu0 %v917_v0  ;;  %v717_v18 = vpack.c.bf16 %v277_v17, %v275_v16  ;;  %v719_v21 = vpack.c.bf16 %v282_v20, %v280_v19  ;;  %v279_v22 = vld [vmem:[#allocation2 + $0x180] sm:$0xff]  ;;  %v281_v23 = vld [vmem:[#allocation2 + $0x190] sm:$0xff]  ;;  %v284_v25 = vld [vmem:[#allocation2 + $0x1a8] sm:$0xff]  ;;  %v1032_v7 = vshrl.u32 %v67_v6, 7 }
  0x3c   :  { %v721_v24 = vpack.c.bf16 %v281_v23, %v279_v22  ;;  %v286_v26 = vld [vmem:[#allocation2 + $0x1b8] sm:$0xff]  ;;  %v283_v28 = vld [vmem:[#allocation2 + $0x1a0] sm:$0xff]  ;;  %v285_v29 = vld [vmem:[#allocation2 + $0x1b0] sm:$0xff] }
  0x3d   :  { %690 = vmatpush1.bf16.msra.mxu1 %v689_v39  ;;  %v723_v27 = vpack.c.bf16 %v286_v26, %v284_v25  ;;  %v725_v30 = vpack.c.bf16 %v285_v29, %v283_v28  ;;  %v288_v31 = vld [vmem:[#allocation2 + $0x1c8] sm:$0xff]  ;;  %v290_v32 = vld [vmem:[#allocation2 + $0x1d8] sm:$0xff]  ;;  %v287_v34 = vld [vmem:[#allocation2 + $0x1c0] sm:$0xff]  ;;  %v73_v10 = vsub.s32 1, %v1032_v7 }
  0x3e   :  { %611 = vmatmul.mubr.msk.f32.gmra.mrb[10].mxu0 %vm77_vm0, %v60_v40  ;;  %692 = vmatprep.subr.bf16.mxu1 %v691_v41  ;;  %v727_v33 = vpack.c.bf16 %v290_v32, %v288_v31  ;;  %v289_v35 = vld [vmem:[#allocation2 + $0x1d0] sm:$0xff]  ;;  %v292_v37 = vld [vmem:[#allocation2 + $0x1e8] sm:$0xff]  ;;  %v294_v38 = vld [vmem:[#allocation2 + $0x1f8] sm:$0xff] }
  0x3f   :  { %202 = vmatprep.mubr.f32.mxu0 %v917_v0  ;;  %v729_v36 = vpack.c.bf16 %v289_v35, %v287_v34  ;;  %v731_v39 = vpack.c.bf16 %v294_v38, %v292_v37  ;;  %v291_v40 = vld [vmem:[#allocation2 + $0x1e0] sm:$0xff]  ;;  %v293_v41 = vld [vmem:[#allocation2 + $0x1f0] sm:$0xff]  ;;  %v453_v44 = vld [vmem:[#allocation5 + $0x88] sm:$0xff] }
  0x40   :  { %v733_v42 = vpack.c.bf16 %v293_v41, %v291_v40  ;;  %v452_v43 = vld [vmem:[#allocation5 + $0x80] sm:$0xff]  ;;  %v455_v49 = vld [vmem:[#allocation5 + $0x98] sm:$0xff]  ;;  %v438_v52 = vld [vmem:[#allocation5 + $0x10] sm:$0xff] }
  0x41   :  { %694 = vmatpush1.bf16.msra.mxu1 %v693_v46  ;;  %v436_v45 = vld [vmem:[#allocation5] sm:$0xff]  ;;  %v735_v46 = vpack.c.bf16 %v453_v44, %v452_v43  ;;  %v441_v59 = vld [vmem:[#allocation5 + $0x28] sm:$0xff] }
  0x42   :  { %612 = vmatmul.mubr.msk.f32.gmra.mrb[12].mxu0 %vm77_vm0, %v61_v47  ;;  %696 = vmatprep.subr.bf16.mxu1 %v695_v48  ;;  %v437_v47 = vld [vmem:[#allocation5 + $0x8] sm:$0xff]  ;;  %v454_v48 = vld [vmem:[#allocation5 + $0x90] sm:$0xff]  ;;  %v440_v58 = vld [vmem:[#allocation5 + $0x20] sm:$0xff] }
  0x43   :  { %208 = vmatprep.mubr.f32.mxu0 %v917_v0  ;;  %v270_v0 = vld [vmem:[#allocation2 + $0x138] sm:$0xff]  ;;  %v737_v50 = vpack.c.bf16 %v437_v47, %v436_v45  ;;  %v739_v51 = vpack.c.bf16 %v455_v49, %v454_v48  ;;  %736 = vmatprep.subr.bf16.mxu0 %v735_v46  ;;  %v745_v62 = vpack.c.bf16 %v441_v59, %v440_v58  ;;  %v464_v6 = vld [vmem:[#allocation5 + $0xe0] sm:$0xff] }
  0x44   :  { %v707_v3 = vpack.c.bf16 %v270_v0, %v268_v1  ;;  %v442_v1 = vld [vmem:[#allocation5 + $0x30] sm:$0xff]  ;;  %v443_v0 = vld [vmem:[#allocation5 + $0x38] sm:$0xff] }
  0x45   :  { %698 = vmatpush1.bf16.msra.mxu1 %v697_v53  ;;  %v439_v53 = vld [vmem:[#allocation5 + $0x18] sm:$0xff]  ;;  %738 = vmatpush3.bf16.msra.mxu0 %v737_v50  ;;  %v749_v4 = vpack.c.bf16 %v443_v0, %v442_v1  ;;  %v462_v1 = vld [vmem:[#allocation5 + $0xd0] sm:$0xff] }
  0x46   :  { %613 = vmatmul.mubr.msk.f32.gmra.mrb[14].mxu0 %vm77_vm0, %v62_v54  ;;  %700 = vmatprep.subr.bf16.mxu1 %v699_v55  ;;  %v456_v54 = vld [vmem:[#allocation5 + $0xa0] sm:$0xff]  ;;  %v457_v55 = vld [vmem:[#allocation5 + $0xa8] sm:$0xff]  ;;  %v741_v56 = vpack.c.bf16 %v439_v53, %v438_v52  ;;  %v463_v0 = vld [vmem:[#allocation5 + $0xd8] sm:$0xff] }
  0x47   :  { %740 = vmatprep.subr.bf16.mxu0 %v739_v51  ;;  %v743_v57 = vpack.c.bf16 %v457_v55, %v456_v54 }
  0x49   :  { %702 = vmatpush1.bf16.msra.mxu1 %v701_v60  ;;  %v458_v60 = vld [vmem:[#allocation5 + $0xb0] sm:$0xff]  ;;  %742 = vmatpush3.bf16.msra.mxu0 %v741_v56 }
  0x4a   :  { %704 = vmatprep.subr.bf16.mxu1 %v703_v61  ;;  %v459_v61 = vld [vmem:[#allocation5 + $0xb8] sm:$0xff]  ;;  %744 = vmatprep.subr.bf16.mxu0 %v743_v57 }
  0x4b   :  { %v747_v63 = vpack.c.bf16 %v459_v61, %v458_v60  ;;  %v444_v61 = vld [vmem:[#allocation5 + $0x40] sm:$0xff] }
  0x4d   :  { %706 = vmatpush1.bf16.msra.mxu1 %v705_v2  ;;  %v460_v2 = vld [vmem:[#allocation5 + $0xc0] sm:$0xff]  ;;  %746 = vmatpush3.bf16.msra.mxu0 %v745_v62  ;;  %v445_v62 = vld [vmem:[#allocation5 + $0x48] sm:$0xff] }
  0x4e   :  { %708 = vmatprep.subr.bf16.mxu1 %v707_v3  ;;  %v461_v3 = vld [vmem:[#allocation5 + $0xc8] sm:$0xff]  ;;  %748 = vmatprep.subr.bf16.mxu0 %v747_v63  ;;  %v753_v63 = vpack.c.bf16 %v445_v62, %v444_v61 }
  0x4f   :  { %v751_v5 = vpack.c.bf16 %v461_v3, %v460_v2  ;;  %v755_v2 = vpack.c.bf16 %v463_v0, %v462_v1  ;;  %v446_v3 = vld [vmem:[#allocation5 + $0x50] sm:$0xff] }
  0x51   :  { %710 = vmatpush1.bf16.msra.mxu1 %v709_v8  ;;  %750 = vmatpush3.bf16.msra.mxu0 %v749_v4  ;;  %v69_v8 = vsub.s32 0, %v1032_v7  ;;  %v447_v4 = vld [vmem:[#allocation5 + $0x58] sm:$0xff] }
  0x52   :  { %712 = vmatprep.subr.bf16.mxu1 %v711_v9  ;;  %752 = vmatprep.subr.bf16.mxu0 %v751_v5  ;;  %v65_v9 = vld [vmem:[%s1090_s2] sm:$0x3]  ;;  %v757_v5 = vpack.c.bf16 %v447_v4, %v446_v3 }
  0x53   :  { %v70_v11 = vrot.slane %v65_v9, %v69_v8  ;;  %v1043_v12 = vrot.slane %v65_v9, %v73_v10  ;;  %v465_v9 = vld [vmem:[#allocation5 + $0xe8] sm:$0xff] }
  0x55   :  { %714 = vmatpush1.bf16.msra.mxu1 %v713_v14  ;;  %754 = vmatpush3.bf16.msra.mxu0 %v753_v63 }
  0x56   :  { %716 = vmatprep.subr.bf16.mxu1 %v715_v15  ;;  %756 = vmatprep.subr.bf16.mxu0 %v755_v2 }
  0x59   :  { %718 = vmatpush1.bf16.msra.mxu1 %v717_v18  ;;  %758 = vmatpush3.bf16.msra.mxu0 %v757_v5 }
  0x5a   :  { %720 = vmatprep.subr.bf16.mxu1 %v719_v21 }
  0x5d   :  { %722 = vmatpush1.bf16.msra.mxu1 %v721_v24 }
  0x5e   :  { %724 = vmatprep.subr.bf16.mxu1 %v723_v27 }
  0x61   :  { %726 = vmatpush1.bf16.msra.mxu1 %v725_v30 }
  0x62   :  { %728 = vmatprep.subr.bf16.mxu1 %v727_v33 }
  0x65   :  { %730 = vmatpush1.bf16.msra.mxu1 %v729_v36 }
  0x66   :  { %732 = vmatprep.subr.bf16.mxu1 %v731_v39 }
  0x69   :  { %734 = vmatpush1.bf16.msra.mxu1 %v733_v42 }
  0xfd   :  { %v168_v13 = vpop.f32.mrb[0].mxu0 }
  0xfe   :  { %v169_v14 = vadd.f32 %v168_v13, %v70_v11  ;;  %v170_v15 = vpop.f32.mrb[1].mxu0  ;;  %v449_v13 = vld [vmem:[#allocation5 + $0x68] sm:$0xff] }
  0xff   :  { %v171_v16 = vadd.f32 %v170_v15, %v1043_v12  ;;  %v466_v15 = vld [vmem:[#allocation5 + $0xf0] sm:$0xff] }
 0x101   :  { %775 = vtanh.f32 %v171_v16  ;;  %v174_v17 = vpop.f32.mrb[2].mxu0  ;;  %v467_v16 = vld [vmem:[#allocation5 + $0xf8] sm:$0xff] }
 0x102   :  { %777 = vtanh.f32 %v169_v14  ;;  %v175_v18 = vadd.f32 %v174_v17, %v70_v11  ;;  %v176_v19 = vpop.f32.mrb[3].mxu0  ;;  %v763_v17 = vpack.c.bf16 %v467_v16, %v466_v15 }
 0x103   :  { %v177_v20 = vadd.f32 %v176_v19, %v1043_v12  ;;  %v451_v19 = vld [vmem:[#allocation5 + $0x78] sm:$0xff] }
 0x105   :  { %779 = vtanh.f32 %v177_v20  ;;  %v180_v21 = vpop.f32.mrb[4].mxu0 }
 0x106   :  { %781 = vtanh.f32 %v175_v18  ;;  %v181_v22 = vadd.f32 %v180_v21, %v70_v11  ;;  %v182_v23 = vpop.f32.mrb[5].mxu0  ;;  %v450_v18 = vld [vmem:[#allocation5 + $0x70] sm:$0xff]  ;;  %v295_v21 = vld [vmem:[%s1092_s4] sm:$0x3] }
 0x107   :  { %v183_v24 = vadd.f32 %v182_v23, %v1043_v12  ;;  %v765_v20 = vpack.c.bf16 %v451_v19, %v450_v18  ;;  %v1060_v23 = vrot.slane %v295_v21, %v73_v10 }
 0x109   :  { %783 = vtanh.f32 %v183_v24  ;;  %v186_v25 = vpop.f32.mrb[6].mxu0 }
 0x10a   :  { %785 = vtanh.f32 %v181_v22  ;;  %v187_v26 = vadd.f32 %v186_v25, %v70_v11  ;;  %v188_v27 = vpop.f32.mrb[7].mxu0  ;;  %v300_v22 = vrot.slane %v295_v21, %v69_v8 }
 0x10b   :  { %v776_v28 = vpop.eup %775  ;;  %v189_v29 = vadd.f32 %v188_v27, %v1043_v12 }
 0x10c   :  { %v778_v30 = vpop.eup %777  ;;  %371 = vmatprep.mubr.f32.mxu1 %v776_v28 }
 0x10d   :  { %787 = vtanh.f32 %v189_v29  ;;  %v192_v31 = vpop.f32.mrb[8].mxu0  ;;  %372 = vmatmul.mubr.f32.vlgmr.msra.gmra.mrb[0].mxu1 %v778_v30 }
 0x10e   :  { %789 = vtanh.f32 %v187_v26  ;;  %v193_v32 = vadd.f32 %v192_v31, %v70_v11  ;;  %v194_v33 = vpop.f32.mrb[9].mxu0 }
 0x10f   :  { %v780_v34 = vpop.eup %779  ;;  %v195_v35 = vadd.f32 %v194_v33, %v1043_v12 }
 0x110   :  { %v782_v36 = vpop.eup %781  ;;  %377 = vmatprep.mubr.f32.mxu1 %v780_v34 }
 0x111   :  { %791 = vtanh.f32 %v195_v35  ;;  %v198_v37 = vpop.f32.mrb[10].mxu0  ;;  %378 = vmatmul.mubr.f32.gmra.mrb[2].mxu1 %v782_v36 }
 0x112   :  { %793 = vtanh.f32 %v193_v32  ;;  %v199_v38 = vadd.f32 %v198_v37, %v70_v11  ;;  %v200_v39 = vpop.f32.mrb[11].mxu0 }
 0x113   :  { %v784_v40 = vpop.eup %783  ;;  %v201_v41 = vadd.f32 %v200_v39, %v1043_v12 }
 0x114   :  { %v786_v42 = vpop.eup %785  ;;  %383 = vmatprep.mubr.f32.mxu1 %v784_v40 }
 0x115   :  { %795 = vtanh.f32 %v201_v41  ;;  %v204_v43 = vpop.f32.mrb[12].mxu0  ;;  %384 = vmatmul.mubr.f32.gmra.mrb[4].mxu1 %v786_v42 }
 0x116   :  { %797 = vtanh.f32 %v199_v38  ;;  %v205_v44 = vadd.f32 %v204_v43, %v70_v11  ;;  %v206_v45 = vpop.f32.mrb[13].mxu0 }
 0x117   :  { %v788_v46 = vpop.eup %787  ;;  %v207_v47 = vadd.f32 %v206_v45, %v1043_v12 }
 0x118   :  { %v790_v48 = vpop.eup %789  ;;  %389 = vmatprep.mubr.f32.mxu1 %v788_v46 }
 0x119   :  { %799 = vtanh.f32 %v207_v47  ;;  %v210_v49 = vpop.f32.mrb[14].mxu0  ;;  %390 = vmatmul.mubr.f32.gmra.mrb[6].mxu1 %v790_v48 }
 0x11a   :  { %801 = vtanh.f32 %v205_v44  ;;  %v211_v50 = vadd.f32 %v210_v49, %v70_v11  ;;  %v212_v51 = vpop.f32.mrb[15].mxu0  ;;  %v759_v11 = vpack.c.bf16 %v465_v9, %v464_v6  ;;  %v614_v6 = vld [vmem:[%s1094_s6] ss:$0 sm:$0xff]  ;;  %s918_s6 = smov [#allocation7]  }
 0x11b   :  { %v792_v52 = vpop.eup %791  ;;  %v213_v53 = vadd.f32 %v212_v51, %v1043_v12  ;;  %v448_v12 = vld [vmem:[#allocation5 + $0x60] sm:$0xff]  ;;  %s593_s27 = sshll.u32 %s918_s6, 4  ;;  %s594_s27 = int_to_ptr.vmem [resolvable:$true] %s593_s27 }
 0x11c   :  { %v794_v54 = vpop.eup %793  ;;  %395 = vmatprep.mubr.f32.mxu1 %v792_v52  ;;  %v761_v14 = vpack.c.bf16 %v449_v13, %v448_v12  ;;  %760 = vmatprep.subr.bf16.mxu0 %v759_v11  ;;  %s883_s28 = scalar_lea.vmem %s594_s27, 1024  ;;  %p888_p3 = scmp.lt.s32.totalorder %s594_s27, %s594_s27 }
 0x11d   :  { %803 = vtanh.f32 %v213_v53  ;;  %396 = vmatmul.mubr.f32.gmra.mrb[8].mxu1 %v794_v54  ;;  %p884_p2 = scmp.ne.s32.totalorder %s594_s27, %s883_s28  ;;  %p889_p4 = scmp.lt.s32.totalorder %s883_s28, %s883_s28 }
 0x11e   :  { %805 = vtanh.f32 %v211_v50  ;;  %762 = vmatpush3.bf16.msra.mxu0 %v761_v14 }
 0x11f   :  { %v796_v55 = vpop.eup %795  ;;  %764 = vmatprep.subr.bf16.mxu0 %v763_v17  ;;  %p890_p5 = por %p889_p4, %p888_p3 }
 0x120   :  { %v798_v56 = vpop.eup %797  ;;  %401 = vmatprep.mubr.f32.mxu1 %v796_v55 }
 0x121   :  { %402 = vmatmul.mubr.f32.gmra.mrb[10].mxu1 %v798_v56  ;;  %p891_p6 = pnand %p890_p5, %p884_p2 }
 0x122   :  { %766 = vmatpush3.bf16.msra.mxu0 %v765_v20 }
 0x123   :  { %v800_v57 = vpop.eup %799 }
 0x124   :  { %v802_v58 = vpop.eup %801  ;;  %407 = vmatprep.mubr.f32.mxu1 %v800_v57 }
 0x125   :  { %408 = vmatmul.mubr.f32.gmra.mrb[12].mxu1 %v802_v58 }
 0x127   :  { %v804_v59 = vpop.eup %803 }
 0x128   :  { %v806_v60 = vpop.eup %805  ;;  %413 = vmatprep.mubr.f32.mxu1 %v804_v59 }
 0x129   :  { %414 = vmatmul.mubr.f32.gmra.mrb[14].mxu1 %v806_v60 }
 0x1e0   :  { %v373_v24 = vpop.f32.mrb[0].mxu1 }
 0x1e1   :  { %v374_v25 = vadd.f32 %v373_v24, %v300_v22  ;;  %v375_v26 = vpop.f32.mrb[1].mxu1 }
 0x1e2   :  { %v376_v27 = vadd.f32 %v375_v26, %v1060_v23 }
 0x1e4   :  { %807 = vtanh.f32 %v376_v27  ;;  %v379_v28 = vpop.f32.mrb[2].mxu1 }
 0x1e5   :  { %809 = vtanh.f32 %v374_v25  ;;  %v380_v29 = vadd.f32 %v379_v28, %v300_v22  ;;  %v381_v30 = vpop.f32.mrb[3].mxu1 }
 0x1e6   :  { %v382_v31 = vadd.f32 %v381_v30, %v1060_v23 }
 0x1e8   :  { %811 = vtanh.f32 %v382_v31  ;;  %v385_v32 = vpop.f32.mrb[4].mxu1 }
 0x1e9   :  { %813 = vtanh.f32 %v380_v29  ;;  %v386_v8 = vadd.f32 %v385_v32, %v300_v22  ;;  %v387_v33 = vpop.f32.mrb[5].mxu1 }
 0x1ea   :  { %v388_v7 = vadd.f32 %v387_v33, %v1060_v23 }
 0x1ec   :  { %815 = vtanh.f32 %v388_v7  ;;  %v391_v10 = vpop.f32.mrb[6].mxu1 }
 0x1ed   :  { %817 = vtanh.f32 %v386_v8  ;;  %v392_v34 = vadd.f32 %v391_v10, %v300_v22  ;;  %v393_v35 = vpop.f32.mrb[7].mxu1 }
 0x1ee   :  { %v808_v36 = vpop.eup %807  ;;  %v394_v37 = vadd.f32 %v393_v35, %v1060_v23 }
 0x1ef   :  { %v810_v38 = vpop.eup %809  ;;  %539 = vmatprep.mubr.f32.mxu0 %v808_v36 }
 0x1f0   :  { %819 = vtanh.f32 %v394_v37  ;;  %v397_v39 = vpop.f32.mrb[8].mxu1  ;;  %540 = vmatmul.mubr.f32.vlgmr.msra.gmra.mrb[16].mxu0 %v810_v38 }
 0x1f1   :  { %821 = vtanh.f32 %v392_v34  ;;  %v398_v40 = vadd.f32 %v397_v39, %v300_v22  ;;  %v399_v41 = vpop.f32.mrb[9].mxu1 }
 0x1f2   :  { %v812_v42 = vpop.eup %811  ;;  %v400_v43 = vadd.f32 %v399_v41, %v1060_v23 }
 0x1f3   :  { %v814_v44 = vpop.eup %813  ;;  %544 = vmatprep.mubr.f32.mxu0 %v812_v42 }
 0x1f4   :  { %823 = vtanh.f32 %v400_v43  ;;  %v403_v45 = vpop.f32.mrb[10].mxu1  ;;  %545 = vmatmul.mubr.f32.gmra.mrb[18].mxu0 %v814_v44 }
 0x1f5   :  { %825 = vtanh.f32 %v398_v40  ;;  %v404_v46 = vadd.f32 %v403_v45, %v300_v22  ;;  %v405_v47 = vpop.f32.mrb[11].mxu1 }
 0x1f6   :  { %v816_v48 = vpop.eup %815  ;;  %v406_v49 = vadd.f32 %v405_v47, %v1060_v23 }
 0x1f7   :  { %v818_v50 = vpop.eup %817  ;;  %549 = vmatprep.mubr.f32.mxu0 %v816_v48 }
 0x1f8   :  { %827 = vtanh.f32 %v406_v49  ;;  %v409_v51 = vpop.f32.mrb[12].mxu1  ;;  %550 = vmatmul.mubr.f32.gmra.mrb[20].mxu0 %v818_v50 }
 0x1f9   :  { %829 = vtanh.f32 %v404_v46  ;;  %v410_v52 = vadd.f32 %v409_v51, %v300_v22  ;;  %v411_v53 = vpop.f32.mrb[13].mxu1 }
 0x1fa   :  { %v820_v54 = vpop.eup %819  ;;  %v412_v55 = vadd.f32 %v411_v53, %v1060_v23 }
 0x1fb   :  { %v822_v56 = vpop.eup %821  ;;  %554 = vmatprep.mubr.f32.mxu0 %v820_v54 }
 0x1fc   :  { %831 = vtanh.f32 %v412_v55  ;;  %v415_v57 = vpop.f32.mrb[14].mxu1  ;;  %555 = vmatmul.mubr.f32.gmra.mrb[22].mxu0 %v822_v56 }
 0x1fd   :  { %833 = vtanh.f32 %v410_v52  ;;  %v416_v58 = vadd.f32 %v415_v57, %v300_v22  ;;  %v417_v59 = vpop.f32.mrb[15].mxu1 }
 0x1fe   :  { %v824_v60 = vpop.eup %823  ;;  %v418_v61 = vadd.f32 %v417_v59, %v1060_v23 }
 0x1ff   :  { %v826_v62 = vpop.eup %825  ;;  %559 = vmatprep.mubr.f32.mxu0 %v824_v60 }
 0x200   :  { %835 = vtanh.f32 %v418_v61  ;;  %560 = vmatmul.mubr.f32.gmra.mrb[24].mxu0 %v826_v62 }
 0x201   :  { %837 = vtanh.f32 %v416_v58 }
 0x202   :  { %v828_v63 = vpop.eup %827 }
 0x203   :  { %v830_v1 = vpop.eup %829  ;;  %564 = vmatprep.mubr.f32.mxu0 %v828_v63 }
 0x204   :  { %565 = vmatmul.mubr.f32.gmra.mrb[26].mxu0 %v830_v1 }
 0x206   :  { %v832_v0 = vpop.eup %831 }
 0x207   :  { %v834_v2 = vpop.eup %833  ;;  %569 = vmatprep.mubr.f32.mxu0 %v832_v0 }
 0x208   :  { %570 = vmatmul.mubr.f32.gmra.mrb[28].mxu0 %v834_v2 }
 0x20a   :  { %v836_v3 = vpop.eup %835 }
 0x20b   :  { %v838_v4 = vpop.eup %837  ;;  %574 = vmatprep.mubr.f32.mxu0 %v836_v3 }
 0x20c   :  { %575 = vmatmul.mubr.f32.gmra.mrb[30].mxu0 %v838_v4 }
 0x2c3   :  { %v647_v5 = vpop.f32.mrb[16].mxu0 }
 0x2c4   :  { %v648_v9 = vpop.f32.mrb[17].mxu0 }
 0x2c5   :  { %v649_v11 = vadd.f32 %v648_v9, %v647_v5 }
 0x2c7   :  { %v542_v12 = vadd.f32 %v649_v11, %v614_v6  ;;  %v650_v13 = vpop.f32.mrb[18].mxu0 }
 0x2c8   :  { %v651_v14 = vpop.f32.mrb[19].mxu0 }
 0x2c9   :  { %580 = vst [vmem:[#allocation7] sm:$0xff] %v542_v12  ;;  %v652_v15 = vadd.f32 %v651_v14, %v650_v13 }
 0x2cb   :  { %v547_v16 = vadd.f32 %v652_v15, %v614_v6  ;;  %v653_v17 = vpop.f32.mrb[20].mxu0 }
 0x2cc   :  { %v654_v18 = vpop.f32.mrb[21].mxu0 }
 0x2cd   :  { %581 = vst [vmem:[#allocation7 + $0x8] sm:$0xff] %v547_v16  ;;  %v655_v19 = vadd.f32 %v654_v18, %v653_v17 }
 0x2cf   :  { %v552_v20 = vadd.f32 %v655_v19, %v614_v6  ;;  %v656_v21 = vpop.f32.mrb[22].mxu0 }
 0x2d0   :  { %v657_v22 = vpop.f32.mrb[23].mxu0 }
 0x2d1   :  { %582 = vst [vmem:[#allocation7 + $0x10] sm:$0xff] %v552_v20  ;;  %v658_v23 = vadd.f32 %v657_v22, %v656_v21 }
 0x2d3   :  { %v557_v24 = vadd.f32 %v658_v23, %v614_v6  ;;  %v659_v25 = vpop.f32.mrb[24].mxu0 }
 0x2d4   :  { %v660_v26 = vpop.f32.mrb[25].mxu0 }
 0x2d5   :  { %583 = vst [vmem:[#allocation7 + $0x18] sm:$0xff] %v557_v24  ;;  %v661_v27 = vadd.f32 %v660_v26, %v659_v25 }
 0x2d7   :  { %v562_v28 = vadd.f32 %v661_v27, %v614_v6  ;;  %v662_v29 = vpop.f32.mrb[26].mxu0 }
 0x2d8   :  { %v663_v30 = vpop.f32.mrb[27].mxu0 }
 0x2d9   :  { %584 = vst [vmem:[#allocation7 + $0x20] sm:$0xff] %v562_v28  ;;  %v664_v31 = vadd.f32 %v663_v30, %v662_v29 }
 0x2db   :  { %v567_v32 = vadd.f32 %v664_v31, %v614_v6  ;;  %v665_v8 = vpop.f32.mrb[28].mxu0 }
 0x2dc   :  { %v666_v33 = vpop.f32.mrb[29].mxu0 }
 0x2dd   :  { %585 = vst [vmem:[#allocation7 + $0x28] sm:$0xff] %v567_v32  ;;  %v667_v7 = vadd.f32 %v666_v33, %v665_v8 }
 0x2df   :  { %v572_v10 = vadd.f32 %v667_v7, %v614_v6  ;;  %v668_v34 = vpop.f32.mrb[30].mxu0 }
 0x2e0   :  { %v669_v35 = vpop.f32.mrb[31].mxu0 }
 0x2e1   :  { %586 = vst [vmem:[#allocation7 + $0x30] sm:$0xff] %v572_v10  ;;  %v670_v36 = vadd.f32 %v669_v35, %v668_v34 }
 0x2e3   :  { %v577_v37 = vadd.f32 %v670_v36, %v614_v6 }
 0x2e5   :  { %587 = vst [vmem:[#allocation7 + $0x38] sm:$0xff] %v577_v37 }
 0x2e6   :  { %894 = shalt.err (!%p891_p6)
}
 0x2e7   :  { %s895_s8 = scalar_lea.hbm %s1095_s7, 1024 }
 0x2e8   :  { %p896_p7 = scmp.ne.s32.totalorder %s1095_s7, %s895_s8  ;;  %p899_p8 = scmp.lt.u32.totalorder %s895_s8, %s1095_s7 }
 0x2ea   :  { %p901_p9 = pnand %p899_p8, %p896_p7 }
 0x2ec   :  { %904 = shalt.err (!%p901_p9)
}
 0x2ed   :  { %599 = dma.vmem_to_hbm [thread:$0]  %s594_s27, 1024, %s1095_s7, [#allocation4], %s915_s3, %s915_s3, %s916_s25  }
 0x2ee   :  { %909 = dma.done.wait [#allocation4], 1024  }
 0x2ef   :  { %910 = vsyncadd [#allocation4], 4294966272 }
 0x2f0   :  { %603 = vsyncpa [#allocation3], 1 }
 0x2f1   :  { %604 = vsyncpa [#allocation6], 1 }
 0x2f2   :  { %605 = vsyncpa [#allocation4], 1 }

</bundles_post_ra>
